<compile_context>
chip_gen: v7x
topology: tpu7x:2x2x1
jax: 0.10.0
libtpu: 0.0.40
codegen_flags: <defaults>
</compile_context>

<pallas_src>
import jax
import jax.numpy as jnp
from jax.experimental import pallas as pl
from jax.experimental.pallas import tpu as pltpu


# ------------------------------- utilities ----------------------------------

def _round_up(x, m):
    return ((x + m - 1) // m) * m


def _pad_last(a, target):
    pad = target - a.shape[-1]
    if pad == 0:
        return a
    widths = [(0, 0)] * (a.ndim - 1) + [(0, pad)]
    return jnp.pad(a, widths)


def _pad2(a, rows, cols):
    return jnp.pad(a, ((0, rows - a.shape[0]), (0, cols - a.shape[1])))


def _pick_batch_tile(B, batch_block):
    """Batch tile: full B when tiny, else >=2 tiles (multiple of 8) so v7x's
    second TensorCore has work under dimension_semantics=("parallel", ...)."""
    if B <= 16:
        return B
    tb = max(8, (B // 2) // 8 * 8)
    return min(tb, batch_block)


def _weight_bytes(prepped):
    tot = 0
    for k in ("w_cat", "uz", "ua"):
        a = prepped[k]
        tot += a.size * a.dtype.itemsize
    return tot


def _vmem_limit_bytes(tb, in_p, hid_p, weight_bytes, single_buffer_weights):
    """Explicit scoped-VMEM budget: resident weights + double-buffered I/O
    tiles + f32 intermediates, +25% headroom."""
    w_bufs = 1 if single_buffer_weights else 2
    io_tiles = 2 * 4 * tb * (in_p + 2 * hid_p)        # x, h, out tiles (f32) x2 buffers
    intermediates = 4 * tb * (2 * hid_p + 4 * hid_p)  # xw + gate temporaries (f32)
    need = int((w_bufs * weight_bytes + io_tiles + intermediates) * 1.25)
    # Floor at 32 MiB (harmless), soft cap below typical physical VMEM.
    # (For plans needing > ~56 MiB on v7x, tile Hp instead -- see TODO above.)
    return max(32 << 20, min(need, 96 << 20))


def _cost_estimate(batch, steps, in_p, hid_p, weight_bytes):
    matmul_flops = 2 * batch * steps * (in_p * 2 * hid_p + 2 * hid_p * hid_p)
    vpu_flops = 8 * batch * steps * hid_p
    transcendentals = 2 * batch * steps * hid_p       # sigmoid + tanh
    bytes_accessed = (4 * batch * steps * (in_p + 2 * hid_p)   # x, h in; out
                      + weight_bytes)
    return pl.CostEstimate(flops=int(matmul_flops + vpu_flops),
                           transcendentals=int(transcendentals),
                           bytes_accessed=int(bytes_accessed))


# ------------------------------- kernels -------------------------------------

def _gru_step(x_bf, h, w_cat, uz, ua, hid_p):
    """One GRU update on a batch tile.

    x_bf: [tb, INp] bf16, h: [tb, Hp] f32, weights bf16 (f32 MXU accumulation).
    The reference forward computes r with the update-gate weights => r == z.
    """
    h_bf = h.astype(jnp.bfloat16)
    # Fused x-projection: [tb, 2Hp] = x @ [Wz | Wa]; split at Hp is lane-aligned.
    xw = jnp.dot(x_bf, w_cat, preferred_element_type=jnp.float32)
    hz = jnp.dot(h_bf, uz, preferred_element_type=jnp.float32)
    z = jax.nn.sigmoid(xw[:, :hid_p] + hz)
    r = z                               # matches the reference (no extra matmul/sigmoid)
    rh_bf = (r * h).astype(jnp.bfloat16)
    ra = jnp.dot(rh_bf, ua, preferred_element_type=jnp.float32)
    h_tilde = jnp.tanh(xw[:, hid_p:] + ra)
    # (1-z)*h + z*h_tilde  ==  h + z*(h_tilde - h): one fewer VPU multiply.
    return h + z * (h_tilde - h)


def gru_cell_kernel(x_ref, h_ref, w_cat_ref, uz_ref, ua_ref, out_ref):
    hid_p = h_ref.shape[-1]
    new_h = _gru_step(x_ref[...].astype(jnp.bfloat16), h_ref[...],
                      w_cat_ref[...], uz_ref[...], ua_ref[...], hid_p)
    out_ref[...] = new_h


def gru_seq_kernel(x_ref, h0_ref, w_cat_ref, uz_ref, ua_ref, out_ref, h_scratch):
    # grid = (batch_tiles, T); time is the inner, "arbitrary" axis.
    t = pl.program_id(1)
    hid_p = h0_ref.shape[-1]

    @pl.when(t == 0)
    def _():
        h_scratch[...] = h0_ref[...]

    new_h = _gru_step(x_ref[0].astype(jnp.bfloat16), h_scratch[...],
                      w_cat_ref[...], uz_ref[...], ua_ref[...], hid_p)
    h_scratch[...] = new_h
    out_ref[0] = new_h


# ------------------------------ weight packing --------------------------------

def prepare_gru_weights(params, dtype=jnp.bfloat16, lane_multiple=128):
    """One-time weight packing (call once, reuse for every step / sequence).

    - transpose PyTorch-layout [out, in] weights to [in, out]
    - zero-pad IN and H up to `lane_multiple` (128 minimum; 256 recommended on
      v6e/v7x for full 256-wide MXU cadence) -> lane-aligned split, dense stores
    - fuse the two x-projection matrices column-wise: [INp, 2*Hp]
    - cast to bf16 for the MXU (all gate math stays f32 in-kernel)
    - drop the reset-gate weights (dead in the reference forward: r == z)
    """
    H, IN = params["update_gate_w"].shape
    in_p = _round_up(IN, lane_multiple)
    hid_p = _round_up(H, lane_multiple)

    wz = _pad2(params["update_gate_w"].T, in_p, hid_p)   # [INp, Hp]
    wa = _pad2(params["act_w"].T, in_p, hid_p)           # [INp, Hp]
    uz = _pad2(params["update_gate_u"].T, hid_p, hid_p)  # [Hp, Hp]
    ua = _pad2(params["act_u"].T, hid_p, hid_p)          # [Hp, Hp]

    return {
        "w_cat": jnp.concatenate([wz, wa], axis=1).astype(dtype),  # [INp, 2Hp]
        "uz": uz.astype(dtype),
        "ua": ua.astype(dtype),
        "input_size": IN, "hidden_size": H,
        "in_padded": in_p, "hidden_padded": hid_p,
    }


def _weight_specs_1d(in_p, hid_p, single_buffer):
    # Constant index_map => weights DMA'd once, resident in VMEM across tiles.
    kw = dict(pipeline_mode=pl.Buffered(1)) if single_buffer else {}
    return [
        pl.BlockSpec((in_p, 2 * hid_p), lambda i: (0, 0), **kw),
        pl.BlockSpec((hid_p, hid_p), lambda i: (0, 0), **kw),
        pl.BlockSpec((hid_p, hid_p), lambda i: (0, 0), **kw),
    ]


def _weight_specs_2d(in_p, hid_p, single_buffer):
    kw = dict(pipeline_mode=pl.Buffered(1)) if single_buffer else {}
    return [
        pl.BlockSpec((in_p, 2 * hid_p), lambda b, t: (0, 0), **kw),
        pl.BlockSpec((hid_p, hid_p), lambda b, t: (0, 0), **kw),
        pl.BlockSpec((hid_p, hid_p), lambda b, t: (0, 0), **kw),
    ]


# ------------------------------ public wrappers --------------------------------

def gru_cell_forward(incoming, state, prepped, *, batch_block=128, alias_state=False):
    """One GRU step. Returns (output, new_state); they are the same array.

    Set alias_state=True (in-place h update) only when `state` is a dead /
    donated intermediate, e.g. inside an outer scan carry.
    """
    B = incoming.shape[0]
    IN, H = prepped["input_size"], prepped["hidden_size"]
    in_p, hid_p = prepped["in_padded"], prepped["hidden_padded"]
    assert incoming.shape == (B, IN) and state.shape == (B, H)

    x = _pad_last(incoming.astype(jnp.float32), in_p)
    h = _pad_last(state.astype(jnp.float32), hid_p)

    tb = _pick_batch_tile(B, batch_block)
    w_bytes = _weight_bytes(prepped)
    single_buf = w_bytes > (8 << 20)   # only bother once weights are large

    extra = {}
    if alias_state:
        extra["input_output_aliases"] = {1: 0}   # state -> new_state, in place

    out = pl.pallas_call(
        gru_cell_kernel,
        out_shape=jax.ShapeDtypeStruct((B, hid_p), jnp.float32),
        grid=(pl.cdiv(B, tb),),
        in_specs=[
            pl.BlockSpec((tb, in_p), lambda i: (i, 0)),     # x tile
            pl.BlockSpec((tb, hid_p), lambda i: (i, 0)),    # h tile
        ] + _weight_specs_1d(in_p, hid_p, single_buf),
        out_specs=pl.BlockSpec((tb, hid_p), lambda i: (i, 0)),
        compiler_params=pltpu.CompilerParams(
            dimension_semantics=("parallel",),
            vmem_limit_bytes=_vmem_limit_bytes(tb, in_p, hid_p, w_bytes, single_buf)),
        cost_estimate=_cost_estimate(B, 1, in_p, hid_p, w_bytes),
        **extra,
    )(x, h, prepped["w_cat"], prepped["uz"], prepped["ua"])

    new_state = out[:, :H] if hid_p != H else out
    return new_state, new_state


def gru_sequence_forward(xs, h0, prepped, *, batch_block=128):
    """Run T GRU steps with the time loop INSIDE the kernel.

    xs: [T, B, input_size], h0: [B, hidden_size].
    Returns (outputs [T, B, H], final_state [B, H]).
    Weights are fetched from HBM once and stay VMEM-resident across all steps.
    """
    T, B, IN = xs.shape
    H = prepped["hidden_size"]
    in_p, hid_p = prepped["in_padded"], prepped["hidden_padded"]
    assert IN == prepped["input_size"] and h0.shape == (B, H)

    x = _pad_last(xs.astype(jnp.float32), in_p)          # [T, B, INp]
    h = _pad_last(h0.astype(jnp.float32), hid_p)         # [B, Hp]

    tb = _pick_batch_tile(B, batch_block)
    w_bytes = _weight_bytes(prepped)
    single_buf = w_bytes > (8 << 20)

    out = pl.pallas_call(
        gru_seq_kernel,
        out_shape=jax.ShapeDtypeStruct((T, B, hid_p), jnp.float32),
        grid=(pl.cdiv(B, tb), T),
        in_specs=[
            pl.BlockSpec((1, tb, in_p), lambda b, t: (t, b, 0)),   # x step stream
            pl.BlockSpec((tb, hid_p), lambda b, t: (b, 0)),        # h0 per batch tile
        ] + _weight_specs_2d(in_p, hid_p, single_buf),
        out_specs=pl.BlockSpec((1, tb, hid_p), lambda b, t: (t, b, 0)),
        scratch_shapes=[pltpu.VMEM((tb, hid_p), jnp.float32)],     # carried h
        compiler_params=pltpu.CompilerParams(
            dimension_semantics=("parallel", "arbitrary"),
            vmem_limit_bytes=_vmem_limit_bytes(tb, in_p, hid_p, w_bytes, single_buf)),
        cost_estimate=_cost_estimate(B, T, in_p, hid_p, w_bytes),
    )(x, h, prepped["w_cat"], prepped["uz"], prepped["ua"])

    outputs = out[..., :H] if hid_p != H else out
    return outputs, outputs[-1]


# ------------------------------ params & reference -----------------------------

def init_params(key, input_size, hidden_size):
    """Mimics nn.Linear default init: U(-1/sqrt(fan_in), 1/sqrt(fan_in))."""
    ks = jax.random.split(key, 6)

    def linear_w(k, out_f, in_f):
        bound = 1.0 / jnp.sqrt(in_f)
        return jax.random.uniform(k, (out_f, in_f), jnp.float32, -bound, bound)

    return {
        "update_gate_w": linear_w(ks[0], hidden_size, input_size),
        "update_gate_u": linear_w(ks[1], hidden_size, hidden_size),
        "reset_gate_w":  linear_w(ks[2], hidden_size, input_size),   # unused in forward
        "reset_gate_u":  linear_w(ks[3], hidden_size, hidden_size),  # unused in forward
        "act_w":         linear_w(ks[4], hidden_size, input_size),
        "act_u":         linear_w(ks[5], hidden_size, hidden_size),
    }


def gru_cell_reference(incoming, state, params, compute_dtype=jnp.bfloat16):
    """Pure-JAX reference matching the PyTorch forward (same matmul precision)."""
    def lin(x, w):  # nn.Linear, weight [out, in], no bias
        return jnp.dot(x.astype(compute_dtype), w.T.astype(compute_dtype),
                       preferred_element_type=jnp.float32)
    z = jax.nn.sigmoid(lin(incoming, params["update_gate_w"])
                       + lin(state, params["update_gate_u"]))
    r = jax.nn.sigmoid(lin(incoming, params["update_gate_w"])
                       + lin(state, params["update_gate_u"]))
    h_tilde = jnp.tanh(lin(incoming, params["act_w"])
                       + lin(r * state, params["act_u"]))
    new_state = (1.0 - z) * state + z * h_tilde
    return new_state, new_state


def gru_sequence_reference(xs, h0, params):
    def step(h, x):
        _, h_new = gru_cell_reference(x, h, params)
        return h_new, h_new
    hT, ys = jax.lax.scan(step, h0, xs)
    return ys, hT


# ------------------------------------ demo -------------------------------------

if __name__ == "__main__":
    batch, input_size, hidden_size, seq_len = 2, 16, 32, 8

    key = jax.random.PRNGKey(0)
    k_params, k_x, k_h, k_seq = jax.random.split(key, 4)

    params = init_params(k_params, input_size, hidden_size)
    incoming = jax.random.normal(k_x, (batch, input_size), jnp.float32)
    state = jax.random.normal(k_h, (batch, hidden_size), jnp.float32)
    xs = jax.random.normal(k_seq, (seq_len, batch, input_size), jnp.float32)

    # One-time weight packing (hoisted out of the per-step / per-sequence calls).
    prepped = prepare_gru_weights(params)

    # --- single step (matches the module's forward signature) ---
    out, new_state = gru_cell_forward(incoming, state, prepped)
    jax.block_until_ready((out, new_state))
    ref_out, ref_new = gru_cell_reference(incoming, state, params)
    assert out.shape == (batch, hidden_size)
    assert new_state.shape == (batch, hidden_size)
    assert jnp.allclose(out, ref_out, atol=2e-3, rtol=2e-3)
    assert jnp.allclose(new_state, ref_new, atol=2e-3, rtol=2e-3)

    # --- full sequence with the time loop inside the kernel ---
    ys, hT = gru_sequence_forward(xs, state, prepped)
    jax.block_until_ready((ys, hT))
    ref_ys, ref_hT = gru_sequence_reference(xs, state, params)
    assert ys.shape == (seq_len, batch, hidden_size)
    assert hT.shape == (batch, hidden_size)
    assert jnp.allclose(ys, ref_ys, atol=2e-3, rtol=2e-3)
    assert jnp.allclose(hT, ref_hT, atol=2e-3, rtol=2e-3)

    print("KERNEL_OK")
</pallas_src>

<mosaic_0001>
module attributes {stable_mosaic.version = 11 : i64} {
  func.func @gru_cell_kernel(%arg0: i32, %arg1: memref<2x128xf32, #tpu.memory_space<vmem>>, %arg2: memref<2x128xf32, #tpu.memory_space<vmem>>, %arg3: memref<128x256xbf16, #tpu.memory_space<vmem>>, %arg4: memref<128x128xbf16, #tpu.memory_space<vmem>>, %arg5: memref<128x128xbf16, #tpu.memory_space<vmem>>, %arg6: memref<2x128xf32, #tpu.memory_space<vmem>>) attributes {dimension_semantics = [#tpu.dimension_semantics<parallel>], iteration_bounds = array<i64: 1>, scalar_prefetch = 0 : i64, scratch_operands = 0 : i64, tpu.core_type = #tpu.core_type<tc>, window_params = [{transform_indices = @transform_0, window_bounds = array<i64: 2, 128>}, {transform_indices = @transform_1, window_bounds = array<i64: 2, 128>}, {pipeline_mode = #tpu.pipeline_mode<synchronous>, transform_indices = @transform_2, window_bounds = array<i64: 128, 256>}, {pipeline_mode = #tpu.pipeline_mode<synchronous>, transform_indices = @transform_3, window_bounds = array<i64: 128, 128>}, {pipeline_mode = #tpu.pipeline_mode<synchronous>, transform_indices = @transform_4, window_bounds = array<i64: 128, 128>}, {transform_indices = @transform_5, window_bounds = array<i64: 2, 128>}]} {
    %c0 = arith.constant 0 : index
    %c0_0 = arith.constant 0 : index
    %0 = vector.load %arg1[%c0, %c0_0] : memref<2x128xf32, #tpu.memory_space<vmem>>, vector<2x128xf32>
    %1 = arith.truncf %0 : vector<2x128xf32> to vector<2x128xbf16>
    %c0_1 = arith.constant 0 : index
    %c0_2 = arith.constant 0 : index
    %2 = vector.load %arg2[%c0_1, %c0_2] : memref<2x128xf32, #tpu.memory_space<vmem>>, vector<2x128xf32>
    %c0_3 = arith.constant 0 : index
    %c0_4 = arith.constant 0 : index
    %3 = vector.load %arg3[%c0_3, %c0_4] : memref<128x256xbf16, #tpu.memory_space<vmem>>, vector<128x256xbf16>
    %c0_5 = arith.constant 0 : index
    %c0_6 = arith.constant 0 : index
    %4 = vector.load %arg4[%c0_5, %c0_6] : memref<128x128xbf16, #tpu.memory_space<vmem>>, vector<128x128xbf16>
    %c0_7 = arith.constant 0 : index
    %c0_8 = arith.constant 0 : index
    %5 = vector.load %arg5[%c0_7, %c0_8] : memref<128x128xbf16, #tpu.memory_space<vmem>>, vector<128x128xbf16>
    %6 = arith.truncf %2 : vector<2x128xf32> to vector<2x128xbf16>
    %cst = arith.constant dense<0.000000e+00> : vector<2x256xf32>
    %7 = tpu.matmul %1, %3, %cst {dimension_numbers = #tpu.dot_dimension_numbers<[1], [0], [0], [1], [0, 0, 1, 1], [], []>} : vector<2x128xbf16>, vector<128x256xbf16>, vector<2x256xf32> -> vector<2x256xf32>
    %cst_9 = arith.constant dense<0.000000e+00> : vector<2x128xf32>
    %8 = tpu.matmul %6, %4, %cst_9 {dimension_numbers = #tpu.dot_dimension_numbers<[1], [0], [0], [1], [0, 0, 1, 1], [], []>} : vector<2x128xbf16>, vector<128x128xbf16>, vector<2x128xf32> -> vector<2x128xf32>
    %9 = vector.extract_strided_slice %7 {offsets = [0, 0], sizes = [2, 128], strides = [1, 1]} : vector<2x256xf32> to vector<2x128xf32>
    %10 = arith.addf %9, %8 : vector<2x128xf32>
    %11 = arith.negf %10 : vector<2x128xf32>
    %12 = math.exp %11 : vector<2x128xf32>
    %cst_10 = arith.constant 1.000000e+00 : f32
    %13 = vector.broadcast %cst_10 : f32 to vector<2x128xf32>
    %14 = arith.addf %13, %12 : vector<2x128xf32>
    %15 = arith.divf %13, %14 : vector<2x128xf32>
    %16 = arith.mulf %15, %2 : vector<2x128xf32>
    %17 = arith.truncf %16 : vector<2x128xf32> to vector<2x128xbf16>
    %cst_11 = arith.constant dense<0.000000e+00> : vector<2x128xf32>
    %18 = tpu.matmul %17, %5, %cst_11 {dimension_numbers = #tpu.dot_dimension_numbers<[1], [0], [0], [1], [0, 0, 1, 1], [], []>} : vector<2x128xbf16>, vector<128x128xbf16>, vector<2x128xf32> -> vector<2x128xf32>
    %19 = vector.extract_strided_slice %7 {offsets = [0, 128], sizes = [2, 128], strides = [1, 1]} : vector<2x256xf32> to vector<2x128xf32>
    %20 = arith.addf %19, %18 : vector<2x128xf32>
    %21 = math.tanh %20 : vector<2x128xf32>
    %22 = arith.subf %21, %2 : vector<2x128xf32>
    %23 = arith.mulf %15, %22 : vector<2x128xf32>
    %24 = arith.addf %2, %23 : vector<2x128xf32>
    %c0_12 = arith.constant 0 : index
    %c0_13 = arith.constant 0 : index
    %25 = vector.load %arg6[%c0_12, %c0_13] : memref<2x128xf32, #tpu.memory_space<vmem>>, vector<2x128xf32>
    tpu.vector_store %arg6[%c0_12, %c0_13], %24 {strides = array<i32>} : memref<2x128xf32, #tpu.memory_space<vmem>>, vector<2x128xf32>,
    return
  }
  func.func @transform_0(%arg0: i32) -> (i32, i32) {
    %c0_i32 = arith.constant 0 : i32
    %c0_i32_0 = arith.constant 0 : i32
    return %arg0, %c0_i32 : i32, i32
  }
  func.func @transform_1(%arg0: i32) -> (i32, i32) {
    %c0_i32 = arith.constant 0 : i32
    %c0_i32_0 = arith.constant 0 : i32
    return %arg0, %c0_i32 : i32, i32
  }
  func.func @transform_2(%arg0: i32) -> (i32, i32) {
    %c0_i32 = arith.constant 0 : i32
    %c0_i32_0 = arith.constant 0 : i32
    %c0_i32_1 = arith.constant 0 : i32
    return %c0_i32, %c0_i32_0 : i32, i32
  }
  func.func @transform_3(%arg0: i32) -> (i32, i32) {
    %c0_i32 = arith.constant 0 : i32
    %c0_i32_0 = arith.constant 0 : i32
    %c0_i32_1 = arith.constant 0 : i32
    return %c0_i32, %c0_i32_0 : i32, i32
  }
  func.func @transform_4(%arg0: i32) -> (i32, i32) {
    %c0_i32 = arith.constant 0 : i32
    %c0_i32_0 = arith.constant 0 : i32
    %c0_i32_1 = arith.constant 0 : i32
    return %c0_i32, %c0_i32_0 : i32, i32
  }
  func.func @transform_5(%arg0: i32) -> (i32, i32) {
    %c0_i32 = arith.constant 0 : i32
    %c0_i32_0 = arith.constant 0 : i32
    return %arg0, %c0_i32 : i32, i32
  }
}

</mosaic_0001>

<bundles_post_ra>
// kernel: tpu_custom_call.1
= control target key start
LH: loop header
LB: loop body
LE: loop exit
PB: predicated region body
PF: predicated region fallthrough
CT: control target
= control target key end

     0   :  { %10 = vsyncpa [#allocation3], 0  ;;  %s855_s0 = inlined_call_operand.hbm [shape: f32[2,128], index: 0, kind: input, shape index: {}]   ;;  %s856_s1 = inlined_call_operand.vmem [shape: f32[2,128], index: 1, kind: input, shape index: {}]   ;;  %s857_s2 = inlined_call_operand.hbm [shape: bf16[128,256], index: 2, kind: input, shape index: {}]   ;;  %s858_s3 = inlined_call_operand.hbm [shape: bf16[128,128], index: 3, kind: input, shape index: {}]   ;;  %s859_s4 = inlined_call_operand.hbm [shape: bf16[128,128], index: 4, kind: input, shape index: {}]   ;;  %s860_s5 = inlined_call_operand.hbm [shape: f32[2,128], index: 5, kind: output, shape index: {}]  }
   0x1   :  { %11 = vsyncpa [#allocation6], 0 }
   0x2   :  { %12 = vsyncpa [#allocation9], 0 }
   0x3   :  { %13 = vsyncpa [#allocation4], 0  ;;  %s723_s18 = smov [#allocation5]   ;;  %s605_s22 = scalar_lea.hbm %s857_s2, 2048 }
   0x4   :  { %s31_s19 = sshll.u32 %s723_s18, 4  ;;  %p606_p0 = scmp.ne.s32.totalorder %s857_s2, %s605_s22  ;;  %s32_s19 = int_to_ptr.vmem [resolvable:$true] %s31_s19 }
   0x5   :  { %p609_p1 = scmp.lt.u32.totalorder %s605_s22, %s857_s2 }
   0x7   :  { %p611_p2 = pnand %p609_p1, %p606_p0 }
   0x9   :  { %614 = shalt.err (!%p611_p2)
}
   0xa   :  { %s615_s27 = scalar_lea.vmem %s32_s19, 2048  ;;  %p620_p4 = scmp.lt.s32.totalorder %s32_s19, %s32_s19 }
   0xb   :  { %p616_p3 = scmp.ne.s32.totalorder %s32_s19, %s615_s27  ;;  %p621_p5 = scmp.lt.s32.totalorder %s615_s27, %s615_s27 }
   0xd   :  { %p622_p6 = por %p621_p5, %p620_p4 }
   0xf   :  { %p623_p7 = pnand %p622_p6, %p616_p3 }
  0x11   :  { %626 = shalt.err (!%p623_p7)
}
  0x12   :  { %s724_s28 = smov 128   ;;  %s725_s29 = smov 8  }
  0x13   :  { %37 = dma.hbm_to_vmem [thread:$0]  %s857_s2, 2048, %s32_s19, [#allocation6], %s724_s28, %s724_s28, %s725_s29  }
  0x14   :  { %s726_s7 = smov [#allocation2]   ;;  %s727_s9 = smov [#allocation7]  }
  0x15   :  { %s20_s8 = sshll.u32 %s726_s7, 4  ;;  %s43_s10 = sshll.u32 %s727_s9, 4  ;;  %s21_s8 = int_to_ptr.vmem [resolvable:$true] %s20_s8  ;;  %s44_s10 = int_to_ptr.vmem [resolvable:$true] %s43_s10 }
  0x16   :  { %s627_s13 = scalar_lea.hbm %s855_s0, 32 }
  0x17   :  { %p628_p8 = scmp.ne.s32.totalorder %s855_s0, %s627_s13  ;;  %p631_p9 = scmp.lt.u32.totalorder %s627_s13, %s855_s0 }
  0x19   :  { %p633_p10 = pnand %p631_p9, %p628_p8 }
  0x1b   :  { %636 = shalt.err (!%p633_p10)
}
  0x1c   :  { %s637_s2 = scalar_lea.vmem %s21_s8, 32  ;;  %p642_p12 = scmp.lt.s32.totalorder %s21_s8, %s21_s8 }
  0x1d   :  { %p638_p11 = scmp.ne.s32.totalorder %s21_s8, %s637_s2  ;;  %p643_p13 = scmp.lt.s32.totalorder %s637_s2, %s637_s2 }
  0x1f   :  { %p644_p0 = por %p643_p13, %p642_p12 }
  0x21   :  { %p645_p1 = pnand %p644_p0, %p638_p11 }
  0x23   :  { %648 = shalt.err (!%p645_p1)
}
  0x24   :  { %23 = dma.hbm_to_vmem [thread:$0]  %s855_s0, 32, %s21_s8, [#allocation3]  }
  0x25   :  { %s649_s22 = scalar_lea.hbm %s858_s3, 1024 }
  0x26   :  { %p650_p2 = scmp.ne.s32.totalorder %s858_s3, %s649_s22  ;;  %p653_p3 = scmp.lt.u32.totalorder %s649_s22, %s858_s3 }
  0x28   :  { %p655_p4 = pnand %p653_p3, %p650_p2 }
  0x2a   :  { %658 = shalt.err (!%p655_p4)
}
  0x2b   :  { %s659_s27 = scalar_lea.vmem %s44_s10, 1024  ;;  %p664_p6 = scmp.lt.s32.totalorder %s44_s10, %s44_s10 }
  0x2c   :  { %p660_p5 = scmp.ne.s32.totalorder %s44_s10, %s659_s27  ;;  %p665_p7 = scmp.lt.s32.totalorder %s659_s27, %s659_s27 }
  0x2e   :  { %p666_p8 = por %p665_p7, %p664_p6 }
  0x30   :  { %p667_p9 = pnand %p666_p8, %p660_p5 }
  0x32   :  { %670 = shalt.err (!%p667_p9)
}
  0x33   :  { %s728_s0 = smov 64   ;;  %s729_s28 = smov 4  }
  0x34   :  { %49 = dma.hbm_to_vmem [thread:$0]  %s858_s3, 1024, %s44_s10, [#allocation6], %s728_s0, %s728_s0, %s729_s28  }
  0x35   :  { %s730_s6 = smov [#allocation8]   ;;  %s671_s11 = scalar_lea.hbm %s859_s4, 1024 }
  0x36   :  { %s55_s7 = sshll.u32 %s730_s6, 4  ;;  %p672_p10 = scmp.ne.s32.totalorder %s859_s4, %s671_s11  ;;  %s56_s7 = int_to_ptr.vmem [resolvable:$true] %s55_s7 }
  0x37   :  { %p675_p11 = scmp.lt.u32.totalorder %s671_s11, %s859_s4 }
  0x39   :  { %p677_p12 = pnand %p675_p11, %p672_p10 }
  0x3b   :  { %680 = shalt.err (!%p677_p12)
}
  0x3c   :  { %s681_s16 = scalar_lea.vmem %s56_s7, 1024  ;;  %p686_p0 = scmp.lt.s32.totalorder %s56_s7, %s56_s7 }
  0x3d   :  { %p682_p13 = scmp.ne.s32.totalorder %s56_s7, %s681_s16  ;;  %p687_p1 = scmp.lt.s32.totalorder %s681_s16, %s681_s16 }
  0x3f   :  { %p688_p2 = por %p687_p1, %p686_p0 }
  0x41   :  { %p689_p3 = pnand %p688_p2, %p682_p13 }
  0x43   :  { %692 = shalt.err (!%p689_p3)
}
  0x44   :  { %61 = dma.hbm_to_vmem [thread:$0]  %s859_s4, 1024, %s56_s7, [#allocation9], %s728_s0, %s728_s0, %s729_s28  }
  0x45   :  { %715 = dma.done.wait [#allocation3], 32  }
  0x46   :  { %716 = vsyncadd [#allocation3], 4294967264 }
  0x47   :  { %717 = dma.done.wait [#allocation6], 3072  }
  0x48   :  { %718 = vsyncadd [#allocation6], 4294964224 }
  0x49   :  { %719 = dma.done.wait [#allocation9], 1024  }
  0x4a   :  { %720 = vsyncadd [#allocation9], 4294966272  ;;  %v731_v0 = vmov 0.0   ;;  %vm732_vm0 = vmmov 0   ;;  %v733_v1 = vmov 0   ;;  %v561_v3 = vld [vmem:[#allocation7] sm:$0xff]  }
  0x4b   :  { %507 = vmatprep.subr.bf16.mxu1 %v731_v0  ;;  %523 = vmatprep.mubr.msk.bf16.mxu1 %vm732_vm0, %v731_v0  ;;  %v559_v2 = vld [vmem:[#allocation5 + $0x4] ss:$8 sps:$4 sm:$0xff]   ;;  %v562_v4 = vld [vmem:[#allocation5] ss:$8 sps:$4 sm:$0xff]   ;;  %v563_v5 = vld [vmem:[#allocation5 + $0x14] ss:$8 sps:$4 sm:$0xff]  }
  0x4c   :  { %239 = vmatprep.mubr.bf16.mxu0 %v733_v1  ;;  %207 = vmatprep.subr.bf16.mxu0 %v559_v2  ;;  %v565_v6 = vld [vmem:[#allocation7 + $0x8] sm:$0xff]   ;;  %v566_v7 = vld [vmem:[#allocation5 + $0x10] ss:$8 sps:$4 sm:$0xff]   ;;  %v571_v11 = vld [vmem:[#allocation5 + $0x34] ss:$8 sps:$4 sm:$0xff]  }
  0x4d   :  { %508 = vmatpush3.bf16.msra.mxu1 %v561_v3  ;;  %208 = vmatpush1.bf16.msra.mxu0 %v562_v4  ;;  %v567_v8 = vld [vmem:[#allocation5 + $0x24] ss:$8 sps:$4 sm:$0xff]   ;;  %v569_v9 = vld [vmem:[#allocation7 + $0x10] sm:$0xff]   ;;  %v570_v10 = vld [vmem:[#allocation5 + $0x20] ss:$8 sps:$4 sm:$0xff]  }
  0x4e   :  { %509 = vmatprep.subr.bf16.mxu1 %v731_v0  ;;  %209 = vmatprep.subr.bf16.mxu0 %v563_v5  ;;  %v573_v12 = vld [vmem:[#allocation7 + $0x18] sm:$0xff]   ;;  %v575_v14 = vld [vmem:[#allocation5 + $0x44] ss:$8 sps:$4 sm:$0xff]   ;;  %v578_v16 = vld [vmem:[#allocation5 + $0x40] ss:$8 sps:$4 sm:$0xff]  }
  0x4f   :  { %v574_v13 = vld [vmem:[#allocation5 + $0x30] ss:$8 sps:$4 sm:$0xff]   ;;  %v577_v15 = vld [vmem:[#allocation7 + $0x20] sm:$0xff]   ;;  %v579_v17 = vld [vmem:[#allocation5 + $0x54] ss:$8 sps:$4 sm:$0xff]  }
  0x50   :  { %v581_v18 = vld [vmem:[#allocation7 + $0x28] sm:$0xff]   ;;  %v582_v19 = vld [vmem:[#allocation5 + $0x50] ss:$8 sps:$4 sm:$0xff]   ;;  %v587_v23 = vld [vmem:[#allocation5 + $0x74] ss:$8 sps:$4 sm:$0xff]  }
  0x51   :  { %510 = vmatpush3.bf16.msra.mxu1 %v565_v6  ;;  %210 = vmatpush1.bf16.msra.mxu0 %v566_v7  ;;  %v583_v20 = vld [vmem:[#allocation5 + $0x64] ss:$8 sps:$4 sm:$0xff]   ;;  %v585_v21 = vld [vmem:[#allocation7 + $0x30] sm:$0xff]   ;;  %v586_v22 = vld [vmem:[#allocation5 + $0x60] ss:$8 sps:$4 sm:$0xff]  }
  0x52   :  { %511 = vmatprep.subr.bf16.mxu1 %v731_v0  ;;  %211 = vmatprep.subr.bf16.mxu0 %v567_v8  ;;  %v589_v24 = vld [vmem:[#allocation7 + $0x38] sm:$0xff]   ;;  %v591_v30 = vld [vmem:[#allocation8] sm:$0xff]   ;;  %v592_v31 = vld [vmem:[#allocation8 + $0x8] sm:$0xff]  }
  0x53   :  { %v825_v25 = vld [vmem:[%s856_s1] sm:$0x3]  ;;  %v590_v26 = vld [vmem:[#allocation5 + $0x70] ss:$8 sps:$4 sm:$0xff]   ;;  %v595_v34 = vld [vmem:[#allocation8 + $0x20] sm:$0xff]   ;;  %s734_s1 = smov [#allocation10]  }
  0x54   :  { %v75_v27 = vld [vmem:[#allocation2] sm:$0x3]  ;;  %v126_v28 = vpack.c.bf16 %v825_v25, %v825_v25  ;;  %v593_v32 = vld [vmem:[#allocation8 + $0x10] sm:$0xff]   ;;  %v596_v35 = vld [vmem:[#allocation8 + $0x28] sm:$0xff]   ;;  %s445_s2 = sshll.u32 %s734_s1, 4  ;;  %s446_s2 = int_to_ptr.vmem [resolvable:$true] %s445_s2 }
  0x55   :  { %512 = vmatpush3.bf16.msra.mxu1 %v569_v9  ;;  %212 = vmatpush1.bf16.msra.mxu0 %v570_v10  ;;  %v76_v29 = vpack.c.bf16 %v75_v27, %v75_v27  ;;  %v594_v33 = vld [vmem:[#allocation8 + $0x18] sm:$0xff]   ;;  %v597_v36 = vld [vmem:[#allocation8 + $0x30] sm:$0xff]   ;;  %s693_s18 = scalar_lea.vmem %s446_s2, 32  ;;  %p698_p5 = scmp.lt.s32.totalorder %s446_s2, %s446_s2 }
  0x56   :  { %513 = vmatprep.subr.bf16.mxu1 %v731_v0  ;;  %213 = vmatprep.subr.bf16.mxu0 %v571_v11  ;;  %v598_v37 = vld [vmem:[#allocation8 + $0x38] sm:$0xff]   ;;  %p694_p4 = scmp.ne.s32.totalorder %s446_s2, %s693_s18  ;;  %p699_p6 = scmp.lt.s32.totalorder %s693_s18, %s693_s18 }
  0x58   :  { %p700_p7 = por %p699_p6, %p698_p5 }
  0x59   :  { %514 = vmatpush3.bf16.msra.mxu1 %v573_v12  ;;  %214 = vmatpush1.bf16.msra.mxu0 %v574_v13 }
  0x5a   :  { %515 = vmatprep.subr.bf16.mxu1 %v731_v0  ;;  %215 = vmatprep.subr.bf16.mxu0 %v575_v14  ;;  %p701_p8 = pnand %p700_p7, %p694_p4 }
  0x5d   :  { %516 = vmatpush3.bf16.msra.mxu1 %v577_v15  ;;  %216 = vmatpush1.bf16.msra.mxu0 %v578_v16 }
  0x5e   :  { %517 = vmatprep.subr.bf16.mxu1 %v731_v0  ;;  %217 = vmatprep.subr.bf16.mxu0 %v579_v17 }
  0x61   :  { %518 = vmatpush3.bf16.msra.mxu1 %v581_v18  ;;  %218 = vmatpush1.bf16.msra.mxu0 %v582_v19 }
  0x62   :  { %519 = vmatprep.subr.bf16.mxu1 %v731_v0  ;;  %219 = vmatprep.subr.bf16.mxu0 %v583_v20 }
  0x65   :  { %520 = vmatpush3.bf16.msra.mxu1 %v585_v21  ;;  %220 = vmatpush1.bf16.msra.mxu0 %v586_v22 }
  0x66   :  { %521 = vmatprep.subr.bf16.mxu1 %v731_v0  ;;  %221 = vmatprep.subr.bf16.mxu0 %v587_v23 }
  0x69   :  { %522 = vmatpush3.bf16.msra.mxu1 %v589_v24  ;;  %222 = vmatpush1.bf16.msra.mxu0 %v590_v26 }
  0x6a   :  { %527 = vmatprep.subr.bf16.mxu0 %v731_v0 }
  0x6c   :  { %524 = vmatmul.mubr.bf16.vlgmr.msra.gmra.mrb[0].mxu1 %v126_v28  ;;  %240 = vmatmul.mubr.bf16.vlgmr.msra.gmra.mrb[0].mxu0 %v76_v29 }
  0x6d   :  { %543 = vmatprep.mubr.msk.bf16.mxu0 %vm732_vm0, %v731_v0  ;;  %528 = vmatpush3.bf16.msra.mxu0 %v591_v30 }
  0x6e   :  { %529 = vmatprep.subr.bf16.mxu0 %v731_v0 }
  0x71   :  { %530 = vmatpush3.bf16.msra.mxu0 %v592_v31 }
  0x72   :  { %531 = vmatprep.subr.bf16.mxu0 %v731_v0 }
  0x75   :  { %532 = vmatpush3.bf16.msra.mxu0 %v593_v32 }
  0x76   :  { %533 = vmatprep.subr.bf16.mxu0 %v731_v0 }
  0x79   :  { %534 = vmatpush3.bf16.msra.mxu0 %v594_v33 }
  0x7a   :  { %535 = vmatprep.subr.bf16.mxu0 %v731_v0 }
  0x7d   :  { %536 = vmatpush3.bf16.msra.mxu0 %v595_v34 }
  0x7e   :  { %537 = vmatprep.subr.bf16.mxu0 %v731_v0 }
  0x81   :  { %538 = vmatpush3.bf16.msra.mxu0 %v596_v35 }
  0x82   :  { %539 = vmatprep.subr.bf16.mxu0 %v731_v0 }
  0x85   :  { %540 = vmatpush3.bf16.msra.mxu0 %v597_v36 }
  0x86   :  { %541 = vmatprep.subr.bf16.mxu0 %v731_v0 }
  0x89   :  { %542 = vmatpush3.bf16.msra.mxu0 %v598_v37 }
 0x13f   :  { %v330_v38 = vpop.f32.mrb[0].mxu1  ;;  %v241_v39 = vpop.f32.mrb[0].mxu0 }
 0x140   :  { %v525_v40 = vpop.f32.mrb[1].mxu1  ;;  %v336_v41 = vadd.f32 %v330_v38, %v241_v39  ;;  %v243_v42 = vpop.f32.mrb[1].mxu0 }
 0x141   :  { %v333_v43 = vpop.f32.mrb[2].mxu1  ;;  %v245_v44 = vpop.f32.mrb[2].mxu0 }
 0x142   :  { %v526_v45 = vpop.f32.mrb[3].mxu1  ;;  %v480_v46 = vmul.f32 -1.442695, %v336_v41  ;;  %v246_v47 = vpop.f32.mrb[3].mxu0 }
 0x144   :  { %599 = vpow2.f32 %v480_v46 }
 0x14e   :  { %v600_v48 = vpop.eup %599 }
 0x14f   :  { %v340_v49 = vadd.f32 1.0, %v600_v48 }
 0x151   :  { %601 = vrcp.f32 %v340_v49 }
 0x15b   :  { %v602_v50 = vpop.eup %601 }
 0x15c   :  { %v343_v51 = vmul.f32 %v602_v50, %v825_v25 }
 0x15e   :  { %v344_v52 = vpack.c.bf16 %v343_v51, %v343_v51 }
 0x160   :  { %544 = vmatmul.mubr.bf16.vlgmr.msra.gmra.mrb[4].mxu0 %v344_v52 }
 0x233   :  { %v427_v53 = vpop.f32.mrb[4].mxu0 }
 0x234   :  { %v433_v54 = vadd.f32 %v427_v53, %v243_v42  ;;  %v545_v55 = vpop.f32.mrb[5].mxu0 }
 0x235   :  { %v430_v56 = vpop.f32.mrb[6].mxu0 }
 0x236   :  { %603 = vtanh.f32 %v433_v54  ;;  %v546_v57 = vpop.f32.mrb[7].mxu0 }
 0x240   :  { %v604_v58 = vpop.eup %603 }
 0x241   :  { %v435_v59 = vsub.f32 %v604_v58, %v825_v25 }
 0x243   :  { %v436_v60 = vmul.f32 %v602_v50, %v435_v59 }
 0x245   :  { %v437_v61 = vadd.f32 %v436_v60, %v825_v25 }
 0x247   :  { %438 = vst [vmem:[#allocation10] sm:$0x3] %v437_v61 }
 0x248   :  { %704 = shalt.err (!%p701_p8)
}
 0x249   :  { %s705_s21 = scalar_lea.hbm %s860_s5, 32 }
 0x24a   :  { %p706_p9 = scmp.ne.s32.totalorder %s860_s5, %s705_s21  ;;  %p709_p10 = scmp.lt.u32.totalorder %s705_s21, %s860_s5 }
 0x24c   :  { %p711_p11 = pnand %p709_p10, %p706_p9 }
 0x24e   :  { %714 = shalt.err (!%p711_p11)
}
 0x24f   :  { %448 = dma.vmem_to_hbm [thread:$0]  %s446_s2, 32, %s860_s5, [#allocation4]  }
 0x250   :  { %721 = dma.done.wait [#allocation4], 32  }
 0x251   :  { %722 = vsyncadd [#allocation4], 4294967264 }
 0x252   :  { %452 = vsyncpa [#allocation3], 1 }
 0x253   :  { %453 = vsyncpa [#allocation6], 1 }
 0x254   :  { %454 = vsyncpa [#allocation9], 1 }
 0x255   :  { %455 = vsyncpa [#allocation4], 1 }

</bundles_post_ra>
